<compile_context>
chip_gen: v7x
topology: tpu7x:2x2x1
jax: 0.10.0
libtpu: 0.0.40
codegen_flags: <defaults>
</compile_context>

<pallas_src>
import math

import jax
import jax.numpy as jnp
from jax.experimental import pallas as pl
from jax.experimental.pallas import tpu as pltpu


def _cond_embedding_kernel(ids_ref, fused_ref, w2_ref, b2_ref, out_ref, h_ref):
    # ids_ref   : int32 [B]          (SMEM; label ids, already clipped to [0, V-1])
    # fused_ref : f32   [V, tdim]    (VMEM; table @ w1 + b1, i.e. Embedding∘Linear1 folded)
    # w2_ref    : bf16  [tdim, tdim] (VMEM; second Linear weight stored as [in, out])
    # b2_ref    : f32   [1, tdim]
    # out_ref   : f32   [B, tdim]
    # h_ref     : f32   [B, tdim]    (VMEM scratch for the gathered rows)
    B = out_ref.shape[0]

    # Embedding lookup (with Linear1 already folded in) as a per-row gather.
    # B is static and tiny, so this loop is fully unrolled at trace time; each
    # iteration is an SMEM scalar read + one dynamic-sublane VMEM row copy.
    for i in range(B):
        row_id = ids_ref[i]
        h_ref[pl.ds(i, 1), :] = fused_ref[pl.ds(row_id, 1), :]

    # Swish in f32 (sigmoid goes to the EUP; keep activations f32 for v5e).
    h = h_ref[...]
    h = h * jax.nn.sigmoid(h)

    # Linear(tdim, tdim): bf16 x bf16 MXU matmul, f32 accumulation.
    out = jnp.dot(h.astype(jnp.bfloat16), w2_ref[...],
                  preferred_element_type=jnp.float32) + b2_ref[...]
    out_ref[...] = out.astype(out_ref.dtype)


def fold_params(table, w1, b1, w2, b2):
    """One-time parameter preprocessing (done at init, not per forward).

    fused[v] = table[v] @ w1 + b1  -- exact refactoring of Embedding -> Linear1
    (padding row 0 of the table is zero, so fused[0] = b1, as in PyTorch).
    w2 is quantized to bf16 to halve the dominant HBM transfer.
    """
    fused = (table.astype(jnp.float32) @ w1.astype(jnp.float32)
             + b1.astype(jnp.float32))                    # (V, tdim) f32, ~22 KB
    return fused, w2.astype(jnp.bfloat16), b2.astype(jnp.float32)


def conditional_embedding(t, fused, w2_bf16, b2):
    """t: int [B] labels in [0, num_labels]; returns f32 [B, tdim]."""
    B = t.shape[0]
    V, tdim = fused.shape
    # Out-of-range labels: PyTorch nn.Embedding would raise; we clamp instead.
    ids = jnp.clip(t.astype(jnp.int32), 0, V - 1)
    b2_2d = b2.reshape(1, tdim)

    bytes_accessed = (ids.size * 4 + fused.size * 4 + w2_bf16.size * 2
                      + b2_2d.size * 4 + B * tdim * 4)
    cost = pl.CostEstimate(
        flops=2 * B * tdim * tdim,          # only the w2 matmul remains
        transcendentals=B * tdim,           # sigmoid
        bytes_accessed=bytes_accessed,
    )

    smem = pl.BlockSpec(memory_space=pltpu.MemorySpace.SMEM)
    vmem = pl.BlockSpec(memory_space=pltpu.MemorySpace.VMEM)
    return pl.pallas_call(
        _cond_embedding_kernel,
        out_shape=jax.ShapeDtypeStruct((B, tdim), jnp.float32),
        in_specs=[smem, vmem, vmem, vmem],
        out_specs=vmem,
        scratch_shapes=[pltpu.VMEM((B, tdim), jnp.float32)],
        cost_estimate=cost,
    )(ids, fused, w2_bf16, b2_2d)


# ----------------------------------------------------------------------------
# Parameter init + references (harness only)
# ----------------------------------------------------------------------------

def _xavier_uniform(key, fan_in, fan_out):
    bound = math.sqrt(6.0 / (fan_in + fan_out))
    return jax.random.uniform(key, (fan_in, fan_out), jnp.float32, -bound, bound)


def init_params(key, num_labels, d_model, tdim):
    k_emb, k_w1, k_w2 = jax.random.split(key, 3)
    # nn.Embedding default init: N(0, 1); padding_idx=0 row zeroed.
    table = jax.random.normal(k_emb, (num_labels + 1, d_model), jnp.float32)
    table = table.at[0].set(0.0)
    # Linear layers: xavier_uniform_ weights, zero biases.
    # (Stored as [in, out] so the kernel does x @ W, matching PyTorch's x @ W.T.)
    w1 = _xavier_uniform(k_w1, d_model, tdim)
    b1 = jnp.zeros((tdim,), jnp.float32)
    w2 = _xavier_uniform(k_w2, tdim, tdim)
    b2 = jnp.zeros((tdim,), jnp.float32)
    return table, w1, b1, w2, b2


def reference_f32(t, table, w1, b1, w2, b2):
    """Full-precision PyTorch-equivalent forward."""
    emb = table[t.astype(jnp.int32)]
    h = emb @ w1 + b1
    h = h * jax.nn.sigmoid(h)
    return h @ w2 + b2


def reference_quantized(t, fused, w2_bf16, b2):
    """Matches the kernel's numerics (folded params, bf16 second matmul)."""
    ids = jnp.clip(t.astype(jnp.int32), 0, fused.shape[0] - 1)
    h = fused[ids]
    h = h * jax.nn.sigmoid(h)
    h_bf = h.astype(jnp.bfloat16).astype(jnp.float32)
    return h_bf @ w2_bf16.astype(jnp.float32) + b2


if __name__ == "__main__":
    num_labels, d_model, tdim = 10, 128, 512
    B = 8

    key = jax.random.PRNGKey(0)
    k_params, k_t = jax.random.split(key)
    table, w1, b1, w2, b2 = init_params(k_params, num_labels, d_model, tdim)
    fused, w2_bf16, b2_f32 = fold_params(table, w1, b1, w2, b2)

    # labels in [0, num_labels] (0 == padding / unconditional token)
    t = jax.random.randint(k_t, (B,), 0, num_labels + 1, dtype=jnp.int32)

    out = conditional_embedding(t, fused, w2_bf16, b2_f32)
    out = jax.block_until_ready(out)
    assert out.shape == (B, tdim) and out.dtype == jnp.float32

    # Tight check against a reference with identical numerics (bf16 w2).
    ref_q = reference_quantized(t, fused, w2_bf16, b2_f32)
    assert jnp.allclose(out, ref_q, atol=2e-3, rtol=2e-3)

    # Loose check against the full-f32 PyTorch-equivalent forward
    # (difference is only the documented bf16 quantization of w2 / matmul inputs).
    ref_f = reference_f32(t, table, w1, b1, w2, b2)
    assert jnp.allclose(out, ref_f, atol=3e-2, rtol=3e-2)

    print("KERNEL_OK")
</pallas_src>

<mosaic_0001>
module attributes {stable_mosaic.version = 11 : i64} {
  func.func @_cond_embedding_kernel(%arg0: memref<8xi32, #tpu.memory_space<smem>>, %arg1: memref<11x512xf32, #tpu.memory_space<vmem>>, %arg2: memref<512x512xbf16, #tpu.memory_space<vmem>>, %arg3: memref<1x512xf32, #tpu.memory_space<vmem>>, %arg4: memref<8x512xf32, #tpu.memory_space<vmem>>, %arg5: memref<8x512xf32, #tpu.memory_space<vmem>>) attributes {dimension_semantics = [], scalar_prefetch = 0 : i64, scratch_operands = 1 : i64, tpu.core_type = #tpu.core_type<tc>} {
    %c0 = arith.constant 0 : index
    %0 = memref.load %arg0[%c0] : memref<8xi32, #tpu.memory_space<smem>>
    %1 = arith.index_cast %0 : i32 to index
    %c0_0 = arith.constant 0 : index
    %2 = vector.load %arg1[%1, %c0_0] : memref<11x512xf32, #tpu.memory_space<vmem>>, vector<1x512xf32>
    %c0_1 = arith.constant 0 : index
    %c0_2 = arith.constant 0 : index
    %3 = vector.load %arg5[%c0_1, %c0_2] : memref<8x512xf32, #tpu.memory_space<vmem>>, vector<1x512xf32>
    tpu.vector_store %arg5[%c0_1, %c0_2], %2 {strides = array<i32>} : memref<8x512xf32, #tpu.memory_space<vmem>>, vector<1x512xf32>,
    %c1 = arith.constant 1 : index
    %4 = memref.load %arg0[%c1] : memref<8xi32, #tpu.memory_space<smem>>
    %5 = arith.index_cast %4 : i32 to index
    %c0_3 = arith.constant 0 : index
    %6 = vector.load %arg1[%5, %c0_3] : memref<11x512xf32, #tpu.memory_space<vmem>>, vector<1x512xf32>
    %c1_4 = arith.constant 1 : index
    %c0_5 = arith.constant 0 : index
    %7 = vector.load %arg5[%c1_4, %c0_5] : memref<8x512xf32, #tpu.memory_space<vmem>>, vector<1x512xf32>
    tpu.vector_store %arg5[%c1_4, %c0_5], %6 {strides = array<i32>} : memref<8x512xf32, #tpu.memory_space<vmem>>, vector<1x512xf32>,
    %c2 = arith.constant 2 : index
    %8 = memref.load %arg0[%c2] : memref<8xi32, #tpu.memory_space<smem>>
    %9 = arith.index_cast %8 : i32 to index
    %c0_6 = arith.constant 0 : index
    %10 = vector.load %arg1[%9, %c0_6] : memref<11x512xf32, #tpu.memory_space<vmem>>, vector<1x512xf32>
    %c2_7 = arith.constant 2 : index
    %c0_8 = arith.constant 0 : index
    %11 = vector.load %arg5[%c2_7, %c0_8] : memref<8x512xf32, #tpu.memory_space<vmem>>, vector<1x512xf32>
    tpu.vector_store %arg5[%c2_7, %c0_8], %10 {strides = array<i32>} : memref<8x512xf32, #tpu.memory_space<vmem>>, vector<1x512xf32>,
    %c3 = arith.constant 3 : index
    %12 = memref.load %arg0[%c3] : memref<8xi32, #tpu.memory_space<smem>>
    %13 = arith.index_cast %12 : i32 to index
    %c0_9 = arith.constant 0 : index
    %14 = vector.load %arg1[%13, %c0_9] : memref<11x512xf32, #tpu.memory_space<vmem>>, vector<1x512xf32>
    %c3_10 = arith.constant 3 : index
    %c0_11 = arith.constant 0 : index
    %15 = vector.load %arg5[%c3_10, %c0_11] : memref<8x512xf32, #tpu.memory_space<vmem>>, vector<1x512xf32>
    tpu.vector_store %arg5[%c3_10, %c0_11], %14 {strides = array<i32>} : memref<8x512xf32, #tpu.memory_space<vmem>>, vector<1x512xf32>,
    %c4 = arith.constant 4 : index
    %16 = memref.load %arg0[%c4] : memref<8xi32, #tpu.memory_space<smem>>
    %17 = arith.index_cast %16 : i32 to index
    %c0_12 = arith.constant 0 : index
    %18 = vector.load %arg1[%17, %c0_12] : memref<11x512xf32, #tpu.memory_space<vmem>>, vector<1x512xf32>
    %c4_13 = arith.constant 4 : index
    %c0_14 = arith.constant 0 : index
    %19 = vector.load %arg5[%c4_13, %c0_14] : memref<8x512xf32, #tpu.memory_space<vmem>>, vector<1x512xf32>
    tpu.vector_store %arg5[%c4_13, %c0_14], %18 {strides = array<i32>} : memref<8x512xf32, #tpu.memory_space<vmem>>, vector<1x512xf32>,
    %c5 = arith.constant 5 : index
    %20 = memref.load %arg0[%c5] : memref<8xi32, #tpu.memory_space<smem>>
    %21 = arith.index_cast %20 : i32 to index
    %c0_15 = arith.constant 0 : index
    %22 = vector.load %arg1[%21, %c0_15] : memref<11x512xf32, #tpu.memory_space<vmem>>, vector<1x512xf32>
    %c5_16 = arith.constant 5 : index
    %c0_17 = arith.constant 0 : index
    %23 = vector.load %arg5[%c5_16, %c0_17] : memref<8x512xf32, #tpu.memory_space<vmem>>, vector<1x512xf32>
    tpu.vector_store %arg5[%c5_16, %c0_17], %22 {strides = array<i32>} : memref<8x512xf32, #tpu.memory_space<vmem>>, vector<1x512xf32>,
    %c6 = arith.constant 6 : index
    %24 = memref.load %arg0[%c6] : memref<8xi32, #tpu.memory_space<smem>>
    %25 = arith.index_cast %24 : i32 to index
    %c0_18 = arith.constant 0 : index
    %26 = vector.load %arg1[%25, %c0_18] : memref<11x512xf32, #tpu.memory_space<vmem>>, vector<1x512xf32>
    %c6_19 = arith.constant 6 : index
    %c0_20 = arith.constant 0 : index
    %27 = vector.load %arg5[%c6_19, %c0_20] : memref<8x512xf32, #tpu.memory_space<vmem>>, vector<1x512xf32>
    tpu.vector_store %arg5[%c6_19, %c0_20], %26 {strides = array<i32>} : memref<8x512xf32, #tpu.memory_space<vmem>>, vector<1x512xf32>,
    %c7 = arith.constant 7 : index
    %28 = memref.load %arg0[%c7] : memref<8xi32, #tpu.memory_space<smem>>
    %29 = arith.index_cast %28 : i32 to index
    %c0_21 = arith.constant 0 : index
    %30 = vector.load %arg1[%29, %c0_21] : memref<11x512xf32, #tpu.memory_space<vmem>>, vector<1x512xf32>
    %c7_22 = arith.constant 7 : index
    %c0_23 = arith.constant 0 : index
    %31 = vector.load %arg5[%c7_22, %c0_23] : memref<8x512xf32, #tpu.memory_space<vmem>>, vector<1x512xf32>
    tpu.vector_store %arg5[%c7_22, %c0_23], %30 {strides = array<i32>} : memref<8x512xf32, #tpu.memory_space<vmem>>, vector<1x512xf32>,
    %c0_24 = arith.constant 0 : index
    %c0_25 = arith.constant 0 : index
    %32 = vector.load %arg5[%c0_24, %c0_25] : memref<8x512xf32, #tpu.memory_space<vmem>>, vector<8x512xf32>
    %33 = arith.negf %32 : vector<8x512xf32>
    %34 = math.exp %33 : vector<8x512xf32>
    %cst = arith.constant 1.000000e+00 : f32
    %35 = vector.broadcast %cst : f32 to vector<8x512xf32>
    %36 = arith.addf %35, %34 : vector<8x512xf32>
    %37 = arith.divf %35, %36 : vector<8x512xf32>
    %38 = arith.mulf %32, %37 : vector<8x512xf32>
    %39 = arith.truncf %38 : vector<8x512xf32> to vector<8x512xbf16>
    %c0_26 = arith.constant 0 : index
    %c0_27 = arith.constant 0 : index
    %40 = vector.load %arg2[%c0_26, %c0_27] : memref<512x512xbf16, #tpu.memory_space<vmem>>, vector<512x512xbf16>
    %cst_28 = arith.constant dense<0.000000e+00> : vector<8x512xf32>
    %41 = tpu.matmul %39, %40, %cst_28 {dimension_numbers = #tpu.dot_dimension_numbers<[1], [0], [0], [1], [0, 0, 1, 1], [], []>} : vector<8x512xbf16>, vector<512x512xbf16>, vector<8x512xf32> -> vector<8x512xf32>
    %c0_29 = arith.constant 0 : index
    %c0_30 = arith.constant 0 : index
    %42 = vector.load %arg3[%c0_29, %c0_30] : memref<1x512xf32, #tpu.memory_space<vmem>>, vector<1x512xf32>
    %43 = vector.broadcast %42 : vector<1x512xf32> to vector<8x512xf32>
    %44 = arith.addf %41, %43 : vector<8x512xf32>
    %c0_31 = arith.constant 0 : index
    %c0_32 = arith.constant 0 : index
    %45 = vector.load %arg4[%c0_31, %c0_32] : memref<8x512xf32, #tpu.memory_space<vmem>>, vector<8x512xf32>
    tpu.vector_store %arg4[%c0_31, %c0_32], %44 {strides = array<i32>} : memref<8x512xf32, #tpu.memory_space<vmem>>, vector<8x512xf32>,
    return
  }
}

</mosaic_0001>

<bundles_post_ra>
// kernel: tpu_custom_call.1
= control target key start
LH: loop header
LB: loop body
LE: loop exit
PB: predicated region body
PF: predicated region fallthrough
CT: control target
= control target key end

     0   :  { %9 = vsyncpa [#allocation6], 0  ;;  %s1844_s0 = inlined_call_operand.hbm [shape: s32[8], index: 0, kind: input, shape index: {}]   ;;  %s1845_s1 = inlined_call_operand.hbm [shape: f32[11,512], index: 1, kind: input, shape index: {}]   ;;  %s1846_s2 = inlined_call_operand.hbm [shape: bf16[512,512], index: 2, kind: input, shape index: {}]   ;;  %s1847_s3 = inlined_call_operand.vmem [shape: f32[1,512], index: 3, kind: input, shape index: {}]   ;;  %s1848_s4 = inlined_call_operand.hbm [shape: f32[8,512], index: 4, kind: output, shape index: {}]  }
   0x1   :  { %10 = vsyncpa [#allocation4], 0 }
   0x2   :  { %11 = vsyncpa [#allocation9], 0 }
   0x3   :  { %12 = vsyncpa [#allocation5], 0  ;;  %s1590_s17 = scalar_lea.hbm %s1844_s0, 16 }
   0x4   :  { %p1591_p0 = scmp.ne.s32.totalorder %s1844_s0, %s1590_s17  ;;  %p1594_p1 = scmp.lt.u32.totalorder %s1590_s17, %s1844_s0 }
   0x6   :  { %p1596_p2 = pnand %p1594_p1, %p1591_p0 }
   0x8   :  { %1599 = shalt.err (!%p1596_p2)
}
   0x9   :  { %s1674_s22 = smov [#allocation3]   ;;  %s1675_s25 = smov [#allocation7]  }
   0xa   :  { %20 = dma.hbm_to_smem %s1844_s0, 16, %s1674_s22, [#allocation6]  }
   0xb   :  { %s26_s26 = sshll.u32 %s1675_s25, 4  ;;  %s1600_s29 = scalar_lea.hbm %s1845_s1, 1024  ;;  %s27_s26 = int_to_ptr.vmem [resolvable:$true] %s26_s26 }
   0xc   :  { %p1601_p3 = scmp.ne.s32.totalorder %s1845_s1, %s1600_s29  ;;  %p1604_p4 = scmp.lt.u32.totalorder %s1600_s29, %s1845_s1 }
   0xe   :  { %p1606_p5 = pnand %p1604_p4, %p1601_p3 }
  0x10   :  { %1609 = shalt.err (!%p1606_p5)
}
  0x11   :  { %s1610_s8 = scalar_lea.vmem %s27_s26, 1024  ;;  %p1615_p7 = scmp.lt.s32.totalorder %s27_s26, %s27_s26 }
  0x12   :  { %p1611_p6 = scmp.ne.s32.totalorder %s27_s26, %s1610_s8  ;;  %p1616_p8 = scmp.lt.s32.totalorder %s1610_s8, %s1610_s8 }
  0x14   :  { %p1617_p9 = por %p1616_p8, %p1615_p7 }
  0x16   :  { %p1618_p10 = pnand %p1617_p9, %p1611_p6 }
  0x18   :  { %1621 = shalt.err (!%p1618_p10)
}
  0x19   :  { %s1676_s0 = smov 512   ;;  %s1677_s9 = smov 32  }
  0x1a   :  { %32 = dma.hbm_to_vmem [thread:$0]  %s1845_s1, 1024, %s27_s26, [#allocation4], %s1676_s0, %s1676_s0, %s1677_s9  }
  0x1b   :  { %s1678_s12 = smov [#allocation8]   ;;  %s1622_s16 = scalar_lea.hbm %s1846_s2, 16384 }
  0x1c   :  { %s38_s13 = sshll.u32 %s1678_s12, 4  ;;  %p1623_p11 = scmp.ne.s32.totalorder %s1846_s2, %s1622_s16  ;;  %s39_s13 = int_to_ptr.vmem [resolvable:$true] %s38_s13 }
  0x1d   :  { %p1626_p12 = scmp.lt.u32.totalorder %s1622_s16, %s1846_s2 }
  0x1f   :  { %p1628_p13 = pnand %p1626_p12, %p1623_p11 }
  0x21   :  { %1631 = shalt.err (!%p1628_p13)
}
  0x22   :  { %s1632_s21 = scalar_lea.vmem %s39_s13, 16384  ;;  %p1637_p1 = scmp.lt.s32.totalorder %s39_s13, %s39_s13 }
  0x23   :  { %p1633_p0 = scmp.ne.s32.totalorder %s39_s13, %s1632_s21  ;;  %p1638_p2 = scmp.lt.s32.totalorder %s1632_s21, %s1632_s21 }
  0x25   :  { %p1639_p3 = por %p1638_p2, %p1637_p1 }
  0x27   :  { %p1640_p4 = pnand %p1639_p3, %p1633_p0 }
  0x29   :  { %1643 = shalt.err (!%p1640_p4)
}
  0x2a   :  { %s1679_s1 = smov 256   ;;  %s1680_s22 = smov 16  }
  0x2b   :  { %44 = dma.hbm_to_vmem [thread:$0]  %s1846_s2, 16384, %s39_s13, [#allocation9], %s1679_s1, %s1679_s1, %s1680_s22  }
  0x2c   :  { %1666 = dma.done.wait [#allocation6], 16  }
  0x2d   :  { %1667 = vsyncadd [#allocation6], 4294967280 }
  0x2e   :  { %1668 = dma.done.wait [#allocation4], 1024  }
  0x2f   :  { %1669 = vsyncadd [#allocation4], 4294966272 }
  0x30   :  { %1670 = dma.done.wait [#allocation9], 16384  }
  0x31   :  { %1671 = vsyncadd [#allocation9], 4294950912 }
  0x32   :  { %56 = sfence }
  0x33   :  { %v1382_v0 = vld [vmem:[#allocation8 + $0x4] ss:$16 sps:$4 sm:$0xff]   ;;  %v1384_v1 = vld [vmem:[#allocation8 + $0xc] ss:$16 sps:$4 sm:$0xff]   ;;  %v1386_v2 = vld [vmem:[#allocation8] ss:$16 sps:$4 sm:$0xff]   ;;  %v67_v40 = vlaneseq }
  0x34   :  { %990 = vmatprep.subr.bf16.mxu0 %v1382_v0  ;;  %v1387_v3 = vld [vmem:[#allocation8 + $0x8] ss:$16 sps:$4 sm:$0xff]   ;;  %1072 = vmatprep.subr.bf16.mxu1 %v1384_v1  ;;  %v1388_v4 = vld [vmem:[#allocation8 + $0x24] ss:$16 sps:$4 sm:$0xff]   ;;  %v1390_v5 = vld [vmem:[#allocation8 + $0x2c] ss:$16 sps:$4 sm:$0xff]  }
  0x35   :  { %991 = vmatpush1.bf16.msra.mxu0 %v1386_v2  ;;  %1073 = vmatpush1.bf16.msra.mxu1 %v1387_v3  ;;  %v1392_v6 = vld [vmem:[#allocation8 + $0x20] ss:$16 sps:$4 sm:$0xff]   ;;  %v1393_v7 = vld [vmem:[#allocation8 + $0x28] ss:$16 sps:$4 sm:$0xff]   ;;  %v1394_v8 = vld [vmem:[#allocation8 + $0x44] ss:$16 sps:$4 sm:$0xff]  }
  0x36   :  { %992 = vmatprep.subr.bf16.mxu0 %v1388_v4  ;;  %1074 = vmatprep.subr.bf16.mxu1 %v1390_v5  ;;  %v1396_v9 = vld [vmem:[#allocation8 + $0x4c] ss:$16 sps:$4 sm:$0xff]   ;;  %v1398_v10 = vld [vmem:[#allocation8 + $0x40] ss:$16 sps:$4 sm:$0xff]   ;;  %v1399_v11 = vld [vmem:[#allocation8 + $0x48] ss:$16 sps:$4 sm:$0xff]  }
  0x37   :  { %v1400_v12 = vld [vmem:[#allocation8 + $0x64] ss:$16 sps:$4 sm:$0xff]   ;;  %v1402_v13 = vld [vmem:[#allocation8 + $0x6c] ss:$16 sps:$4 sm:$0xff]   ;;  %s1743_s2 = sld [smem:[#allocation3]]  ;;  %s1745_s25 = sld [smem:[#allocation3 + $0x1]] }
  0x38   :  { %v1404_v14 = vld [vmem:[#allocation8 + $0x60] ss:$16 sps:$4 sm:$0xff]   ;;  %v1405_v15 = vld [vmem:[#allocation8 + $0x68] ss:$16 sps:$4 sm:$0xff]   ;;  %v1406_v16 = vld [vmem:[#allocation8 + $0x84] ss:$16 sps:$4 sm:$0xff]  }
  0x39   :  { %993 = vmatpush1.bf16.msra.mxu0 %v1392_v6  ;;  %1075 = vmatpush1.bf16.msra.mxu1 %v1393_v7  ;;  %v1408_v17 = vld [vmem:[#allocation8 + $0x8c] ss:$16 sps:$4 sm:$0xff]   ;;  %s1747_s26 = sld [smem:[#allocation3 + $0x2]]  ;;  %v1410_v18 = vld [vmem:[#allocation8 + $0x80] ss:$16 sps:$4 sm:$0xff]   ;;  %s1751_s29 = sld [smem:[#allocation3 + $0x3]] }
  0x3a   :  { %994 = vmatprep.subr.bf16.mxu0 %v1394_v8  ;;  %1076 = vmatprep.subr.bf16.mxu1 %v1396_v9  ;;  %v1411_v19 = vld [vmem:[#allocation8 + $0x88] ss:$16 sps:$4 sm:$0xff]   ;;  %v1412_v20 = vld [vmem:[#allocation8 + $0xa4] ss:$16 sps:$4 sm:$0xff]   ;;  %v1414_v21 = vld [vmem:[#allocation8 + $0xac] ss:$16 sps:$4 sm:$0xff]  }
  0x3b   :  { %v1416_v22 = vld [vmem:[#allocation8 + $0xa0] ss:$16 sps:$4 sm:$0xff]   ;;  %v1417_v23 = vld [vmem:[#allocation8 + $0xa8] ss:$16 sps:$4 sm:$0xff]   ;;  %v1418_v24 = vld [vmem:[#allocation8 + $0xc4] ss:$16 sps:$4 sm:$0xff]  }
  0x3c   :  { %v1420_v25 = vld [vmem:[#allocation8 + $0xcc] ss:$16 sps:$4 sm:$0xff]   ;;  %s1756_s0 = sld [smem:[#allocation3 + $0x4]]  ;;  %v1422_v26 = vld [vmem:[#allocation8 + $0xc0] ss:$16 sps:$4 sm:$0xff]   ;;  %s1758_s9 = sld [smem:[#allocation3 + $0x5]] }
  0x3d   :  { %995 = vmatpush1.bf16.msra.mxu0 %v1398_v10  ;;  %1077 = vmatpush1.bf16.msra.mxu1 %v1399_v11  ;;  %s58_s27 = sshra.s32 %s1743_s2, 3  ;;  %s74_s28 = sshra.s32 %s1745_s25, 3  ;;  %v1423_v27 = vld [vmem:[#allocation8 + $0xc8] ss:$16 sps:$4 sm:$0xff]   ;;  %v1424_v28 = vld [vmem:[#allocation8 + $0xe4] ss:$16 sps:$4 sm:$0xff]  }
  0x3e   :  { %996 = vmatprep.subr.bf16.mxu0 %v1400_v12  ;;  %1078 = vmatprep.subr.bf16.mxu1 %v1402_v13  ;;  %s61_s30 = sand.u32 7, %s1743_s2  ;;  %s1354_s5 = sshll.u32 %s58_s27, 5  ;;  %v1426_v29 = vld [vmem:[#allocation8 + $0xec] ss:$16 sps:$4 sm:$0xff]   ;;  %v1428_v30 = vld [vmem:[#allocation8 + $0xe0] ss:$16 sps:$4 sm:$0xff]  }
  0x3f   :  { %s77_s6 = sand.u32 7, %s1745_s25  ;;  %s1355_s7 = sshll.u32 %s74_s28, 5  ;;  %v1429_v31 = vld [vmem:[#allocation8 + $0xe8] ss:$16 sps:$4 sm:$0xff]   ;;  %v1430_v32 = vld [vmem:[#allocation8 + $0x104] ss:$16 sps:$4 sm:$0xff]  }
  0x40   :  { %s87_s8 = sshra.s32 %s1747_s26, 3  ;;  %s1760_s10 = sadd.s32 %s1354_s5, %s61_s30  ;;  %v1432_v33 = vld [vmem:[#allocation8 + $0x10c] ss:$16 sps:$4 sm:$0xff]   ;;  %v1434_v34 = vld [vmem:[#allocation8 + $0x100] ss:$16 sps:$4 sm:$0xff]   ;;  %vm1788_vm0 = vcmp.lt.s32.totalorder %v67_v40, 512 }
  0x41   :  { %997 = vmatpush1.bf16.msra.mxu0 %v1404_v14  ;;  %1079 = vmatpush1.bf16.msra.mxu1 %v1405_v15  ;;  %s1762_s11 = sadd.s32 %s1355_s7, %s77_s6  ;;  %s1764_s12 = sld [smem:[#allocation3 + $0x6]]  ;;  %v1435_v35 = vld [vmem:[#allocation8 + $0x108] ss:$16 sps:$4 sm:$0xff]   ;;  %v1436_v36 = vld [vmem:[#allocation8 + $0x124] ss:$16 sps:$4 sm:$0xff]  }
  0x42   :  { %998 = vmatprep.subr.bf16.mxu0 %v1406_v16  ;;  %1080 = vmatprep.subr.bf16.mxu1 %v1408_v17  ;;  %s90_s13 = sand.u32 7, %s1747_s26  ;;  %s1356_s14 = sshll.u32 %s87_s8, 5  ;;  %v1438_v37 = vld [vmem:[#allocation8 + $0x12c] ss:$16 sps:$4 sm:$0xff]   ;;  %v1440_v38 = vld [vmem:[#allocation8 + $0x120] ss:$16 sps:$4 sm:$0xff]  }
  0x43   :  { %s1767_s15 = sld [smem:[#allocation3 + $0x7]]  ;;  %s100_s16 = sshra.s32 %s1751_s29, 3  ;;  %v1441_v39 = vld [vmem:[#allocation8 + $0x128] ss:$16 sps:$4 sm:$0xff]   ;;  %v1442_v41 = vld [vmem:[#allocation8 + $0x144] ss:$16 sps:$4 sm:$0xff]  }
  0x44   :  { %s1770_s17 = sadd.s32 %s1356_s14, %s90_s13  ;;  %s113_s18 = sshra.s32 %s1756_s0, 3  ;;  %v1444_v42 = vld [vmem:[#allocation8 + $0x14c] ss:$16 sps:$4 sm:$0xff]   ;;  %v1446_v43 = vld [vmem:[#allocation8 + $0x140] ss:$16 sps:$4 sm:$0xff]  }
  0x45   :  { %999 = vmatpush1.bf16.msra.mxu0 %v1410_v18  ;;  %1081 = vmatpush1.bf16.msra.mxu1 %v1411_v19  ;;  %s103_s19 = sand.u32 7, %s1751_s29  ;;  %s126_s20 = sshra.s32 %s1758_s9, 3  ;;  %v1447_v44 = vld [vmem:[#allocation8 + $0x148] ss:$16 sps:$4 sm:$0xff]   ;;  %v1448_v46 = vld [vmem:[#allocation8 + $0x164] ss:$16 sps:$4 sm:$0xff]  }
  0x46   :  { %1000 = vmatprep.subr.bf16.mxu0 %v1412_v20  ;;  %1082 = vmatprep.subr.bf16.mxu1 %v1414_v21  ;;  %s1357_s21 = sshll.u32 %s100_s16, 5  ;;  %s116_s1 = sand.u32 7, %s1756_s0  ;;  %v1450_v47 = vld [vmem:[#allocation8 + $0x16c] ss:$16 sps:$4 sm:$0xff]   ;;  %v1452_v48 = vld [vmem:[#allocation8 + $0x160] ss:$16 sps:$4 sm:$0xff]  }
  0x47   :  { %s1358_s22 = sshll.u32 %s113_s18, 5  ;;  %s139_s23 = sshra.s32 %s1764_s12, 3  ;;  %v1453_v49 = vld [vmem:[#allocation8 + $0x168] ss:$16 sps:$4 sm:$0xff]   ;;  %v1454_v50 = vld [vmem:[#allocation8 + $0x184] ss:$16 sps:$4 sm:$0xff]  }
  0x48   :  { %s129_s24 = sand.u32 7, %s1758_s9  ;;  %s1359_s2 = sshll.u32 %s126_s20, 5  ;;  %v1456_v51 = vld [vmem:[#allocation8 + $0x18c] ss:$16 sps:$4 sm:$0xff]   ;;  %v1458_v60 = vld [vmem:[#allocation8 + $0x180] ss:$16 sps:$4 sm:$0xff]  }
  0x49   :  { %1001 = vmatpush1.bf16.msra.mxu0 %v1416_v22  ;;  %1083 = vmatpush1.bf16.msra.mxu1 %v1417_v23  ;;  %s142_s25 = sand.u32 7, %s1764_s12  ;;  %s152_s26 = sshra.s32 %s1767_s15, 3  ;;  %v1459_v61 = vld [vmem:[#allocation8 + $0x188] ss:$16 sps:$4 sm:$0xff]   ;;  %v1460_v62 = vld [vmem:[#allocation8 + $0x1a4] ss:$16 sps:$4 sm:$0xff]  }
  0x4a   :  { %1002 = vmatprep.subr.bf16.mxu0 %v1418_v24  ;;  %1084 = vmatprep.subr.bf16.mxu1 %v1420_v25  ;;  %s1360_s27 = sshll.u32 %s139_s23, 5  ;;  %s155_s28 = sand.u32 7, %s1767_s15  ;;  %v1462_v63 = vld [vmem:[#allocation8 + $0x1ac] ss:$16 sps:$4 sm:$0xff]   ;;  %v1464_v0 = vld [vmem:[#allocation8 + $0x1a0] ss:$16 sps:$4 sm:$0xff]  }
  0x4b   :  { %s1781_s29 = sadd.s32 %s1357_s21, %s103_s19  ;;  %s1361_s30 = sshll.u32 %s152_s26, 5  ;;  %v1465_v1 = vld [vmem:[#allocation8 + $0x1a8] ss:$16 sps:$4 sm:$0xff]   ;;  %v1466_v2 = vld [vmem:[#allocation8 + $0x1c4] ss:$16 sps:$4 sm:$0xff]  }
  0x4c   :  { %s1783_s5 = sadd.s32 %s1358_s22, %s116_s1  ;;  %s1785_s6 = sadd.s32 %s1359_s2, %s129_s24  ;;  %v1468_v3 = vld [vmem:[#allocation8 + $0x1cc] ss:$16 sps:$4 sm:$0xff]   ;;  %v1470_v4 = vld [vmem:[#allocation8 + $0x1c0] ss:$16 sps:$4 sm:$0xff]   ;;  %v1471_v7 = vld [vmem:[#allocation8 + $0x1c8] ss:$16 sps:$4 sm:$0xff]  }
  0x4d   :  { %1003 = vmatpush1.bf16.msra.mxu0 %v1422_v26  ;;  %1085 = vmatpush1.bf16.msra.mxu1 %v1423_v27  ;;  %s1792_s7 = sadd.s32 %s1360_s27, %s142_s25  ;;  %s1794_s8 = sadd.s32 %s1361_s30, %s155_s28  ;;  %v1472_v10 = vld [vmem:[#allocation8 + $0x1e4] ss:$16 sps:$4 sm:$0xff]   ;;  %v1474_v11 = vld [vmem:[#allocation8 + $0x1ec] ss:$16 sps:$4 sm:$0xff]   ;;  %v1476_v12 = vld [vmem:[#allocation8 + $0x1e0] ss:$16 sps:$4 sm:$0xff]  }
  0x4e   :  { %1004 = vmatprep.subr.bf16.mxu0 %v1424_v28  ;;  %1086 = vmatprep.subr.bf16.mxu1 %v1426_v29  ;;  %s65_s0 = scalar_lea.vmem [#allocation7], %s1760_s10  ;;  %s81_s9 = scalar_lea.vmem [#allocation7], %s1762_s11  ;;  %v1477_v13 = vld [vmem:[#allocation8 + $0x1e8] ss:$16 sps:$4 sm:$0xff]   ;;  %v1480_v14 = vld [vmem:[#allocation8 + $0x204] ss:$16 sps:$4 sm:$0xff]  }
  0x4f   :  { %v66_v52 = vld [vmem:[%s65_s0] ss:$8 sm:$0xf]  ;;  %s94_s12 = scalar_lea.vmem [#allocation7], %s1770_s17  ;;  %s107_s13 = scalar_lea.vmem [#allocation7], %s1781_s29 }
  0x50   :  { %v82_v53 = vld [vmem:[%s81_s9] ss:$8 sm:$0xf]  ;;  %71 = vst.msk [vmem:[#allocation2] ss:$8 sm:$0xf] %vm1788_vm0, %v66_v52 }
  0x51   :  { %1005 = vmatpush1.bf16.msra.mxu0 %v1428_v30  ;;  %1087 = vmatpush1.bf16.msra.mxu1 %v1429_v31  ;;  %84 = vst.msk [vmem:[#allocation2 + $0x1] ss:$8 sm:$0xf] %vm1788_vm0, %v82_v53  ;;  %v95_v54 = vld [vmem:[%s94_s12] ss:$8 sm:$0xf] }
  0x52   :  { %1006 = vmatprep.subr.bf16.mxu0 %v1430_v32  ;;  %1088 = vmatprep.subr.bf16.mxu1 %v1432_v33  ;;  %v108_v55 = vld [vmem:[%s107_s13] ss:$8 sm:$0xf]  ;;  %97 = vst.msk [vmem:[#allocation2 + $0x2] ss:$8 sm:$0xf] %vm1788_vm0, %v95_v54 }
  0x53   :  { %110 = vst.msk [vmem:[#allocation2 + $0x3] ss:$8 sm:$0xf] %vm1788_vm0, %v108_v55  ;;  %s120_s10 = scalar_lea.vmem [#allocation7], %s1783_s5  ;;  %s133_s11 = scalar_lea.vmem [#allocation7], %s1785_s6 }
  0x54   :  { %v121_v56 = vld [vmem:[%s120_s10] ss:$8 sm:$0xf]  ;;  %s146_s14 = scalar_lea.vmem [#allocation7], %s1792_s7  ;;  %s159_s15 = scalar_lea.vmem [#allocation7], %s1794_s8 }
  0x55   :  { %1007 = vmatpush1.bf16.msra.mxu0 %v1434_v34  ;;  %1089 = vmatpush1.bf16.msra.mxu1 %v1435_v35  ;;  %v134_v57 = vld [vmem:[%s133_s11] ss:$8 sm:$0xf]  ;;  %123 = vst.msk [vmem:[#allocation2 + $0x4] ss:$8 sm:$0xf] %vm1788_vm0, %v121_v56 }
  0x56   :  { %1008 = vmatprep.subr.bf16.mxu0 %v1436_v36  ;;  %1090 = vmatprep.subr.bf16.mxu1 %v1438_v37  ;;  %136 = vst.msk [vmem:[#allocation2 + $0x5] ss:$8 sm:$0xf] %vm1788_vm0, %v134_v57  ;;  %v147_v58 = vld [vmem:[%s146_s14] ss:$8 sm:$0xf] }
  0x57   :  { %v160_v59 = vld [vmem:[%s159_s15] ss:$8 sm:$0xf]  ;;  %149 = vst.msk [vmem:[#allocation2 + $0x6] ss:$8 sm:$0xf] %vm1788_vm0, %v147_v58 }
  0x58   :  { %162 = vst.msk [vmem:[#allocation2 + $0x7] ss:$8 sm:$0xf] %vm1788_vm0, %v160_v59  ;;  %v1483_v15 = vld [vmem:[#allocation8 + $0x20c] ss:$16 sps:$4 sm:$0xff]   ;;  %s1681_s18 = smov [#allocation10]  }
  0x59   :  { %1009 = vmatpush1.bf16.msra.mxu0 %v1440_v38  ;;  %1091 = vmatpush1.bf16.msra.mxu1 %v1441_v39  ;;  %v1478_v23 = vld [vmem:[#allocation8 + $0x200] ss:$16 sps:$4 sm:$0xff]   ;;  %v1481_v26 = vld [vmem:[#allocation8 + $0x208] ss:$16 sps:$4 sm:$0xff]   ;;  %v1486_v27 = vld [vmem:[#allocation8 + $0x224] ss:$16 sps:$4 sm:$0xff]  }
  0x5a   :  { %1010 = vmatprep.subr.bf16.mxu0 %v1442_v41  ;;  %1092 = vmatprep.subr.bf16.mxu1 %v1444_v42  ;;  %v1489_v29 = vld [vmem:[#allocation8 + $0x22c] ss:$16 sps:$4 sm:$0xff]   ;;  %v1484_v30 = vld [vmem:[#allocation8 + $0x220] ss:$16 sps:$4 sm:$0xff]   ;;  %v1487_v31 = vld [vmem:[#allocation8 + $0x228] ss:$16 sps:$4 sm:$0xff]  }
  0x5b   :  { %v1492_v32 = vld [vmem:[#allocation8 + $0x244] ss:$16 sps:$4 sm:$0xff]   ;;  %v1495_v33 = vld [vmem:[#allocation8 + $0x24c] ss:$16 sps:$4 sm:$0xff]   ;;  %v1490_v35 = vld [vmem:[#allocation8 + $0x240] ss:$16 sps:$4 sm:$0xff]  }
  0x5c   :  { %v1493_v36 = vld [vmem:[#allocation8 + $0x248] ss:$16 sps:$4 sm:$0xff]   ;;  %v1498_v38 = vld [vmem:[#allocation8 + $0x264] ss:$16 sps:$4 sm:$0xff]   ;;  %v1501_v39 = vld [vmem:[#allocation8 + $0x26c] ss:$16 sps:$4 sm:$0xff]  }
  0x5d   :  { %1011 = vmatpush1.bf16.msra.mxu0 %v1446_v43  ;;  %1093 = vmatpush1.bf16.msra.mxu1 %v1447_v44  ;;  %v1496_v41 = vld [vmem:[#allocation8 + $0x260] ss:$16 sps:$4 sm:$0xff]   ;;  %v1499_v42 = vld [vmem:[#allocation8 + $0x268] ss:$16 sps:$4 sm:$0xff]   ;;  %v1504_v43 = vld [vmem:[#allocation8 + $0x284] ss:$16 sps:$4 sm:$0xff]  }
  0x5e   :  { %1012 = vmatprep.subr.bf16.mxu0 %v1448_v46  ;;  %1094 = vmatprep.subr.bf16.mxu1 %v1450_v47  ;;  %v1507_v44 = vld [vmem:[#allocation8 + $0x28c] ss:$16 sps:$4 sm:$0xff]   ;;  %v1502_v45 = vld [vmem:[#allocation8 + $0x280] ss:$16 sps:$4 sm:$0xff]   ;;  %v1505_v46 = vld [vmem:[#allocation8 + $0x288] ss:$16 sps:$4 sm:$0xff]  }
  0x5f   :  { %v165_v5 = vld [vmem:[#allocation2 + $0x8] sm:$0xff]  ;;  %v164_v6 = vld [vmem:[#allocation2] sm:$0xff]  ;;  %v1820_v34 = vld [vmem:[#allocation2 + $0x18] sm:$0xff]  ;;  %s1164_s19 = sshll.u32 %s1681_s18, 4  ;;  %s1165_s19 = int_to_ptr.vmem [resolvable:$true] %s1164_s19 }
  0x60   :  { %v1223_v8 = vmul.f32 -1.442695, %v165_v5  ;;  %v1222_v9 = vmul.f32 -1.442695, %v164_v6  ;;  %v1225_v37 = vmul.f32 -1.442695, %v1820_v34  ;;  %p1649_p6 = scmp.lt.s32.totalorder %s1165_s19, %s1165_s19 }
  0x61   :  { %1013 = vmatpush1.bf16.msra.mxu0 %v1452_v48  ;;  %1095 = vmatpush1.bf16.msra.mxu1 %v1453_v49  ;;  %v1510_v47 = vld [vmem:[#allocation8 + $0x2a4] ss:$16 sps:$4 sm:$0xff]   ;;  %v1513_v48 = vld [vmem:[#allocation8 + $0x2ac] ss:$16 sps:$4 sm:$0xff]   ;;  %v1514_v56 = vld [vmem:[#allocation8 + $0x2c0] ss:$16 sps:$4 sm:$0xff]  }
  0x62   :  { %1014 = vmatprep.subr.bf16.mxu0 %v1454_v50  ;;  %1096 = vmatprep.subr.bf16.mxu1 %v1456_v51  ;;  %1574 = vpow2.f32 %v1223_v8  ;;  %v1508_v50 = vld [vmem:[#allocation8 + $0x2a0] ss:$16 sps:$4 sm:$0xff]   ;;  %v1511_v51 = vld [vmem:[#allocation8 + $0x2a8] ss:$16 sps:$4 sm:$0xff]   ;;  %v1516_v52 = vld [vmem:[#allocation8 + $0x2c4] ss:$16 sps:$4 sm:$0xff]  }
  0x63   :  { %1576 = vpow2.f32 %v1222_v9  ;;  %v1519_v53 = vld [vmem:[#allocation8 + $0x2cc] ss:$16 sps:$4 sm:$0xff]   ;;  %v1823_v55 = vld [vmem:[#allocation2 + $0x10] sm:$0xff]  ;;  %v1517_v57 = vld [vmem:[#allocation8 + $0x2c8] ss:$16 sps:$4 sm:$0xff]  }
  0x64   :  { %v1522_v58 = vld [vmem:[#allocation8 + $0x2e4] ss:$16 sps:$4 sm:$0xff]   ;;  %v1525_v59 = vld [vmem:[#allocation8 + $0x2ec] ss:$16 sps:$4 sm:$0xff]   ;;  %v1535_v8 = vld [vmem:[#allocation8 + $0x328] ss:$16 sps:$4 sm:$0xff]  }
  0x65   :  { %1015 = vmatpush1.bf16.msra.mxu0 %v1458_v60  ;;  %1097 = vmatpush1.bf16.msra.mxu1 %v1459_v61  ;;  %v1224_v60 = vmul.f32 -1.442695, %v1823_v55  ;;  %v1520_v61 = vld [vmem:[#allocation8 + $0x2e0] ss:$16 sps:$4 sm:$0xff]  }
  0x66   :  { %1016 = vmatprep.subr.bf16.mxu0 %v1460_v62  ;;  %1098 = vmatprep.subr.bf16.mxu1 %v1462_v63  ;;  %v1523_v62 = vld [vmem:[#allocation8 + $0x2e8] ss:$16 sps:$4 sm:$0xff]   ;;  %v1528_v63 = vld [vmem:[#allocation8 + $0x304] ss:$16 sps:$4 sm:$0xff]  }
  0x69   :  { %1017 = vmatpush1.bf16.msra.mxu0 %v1464_v0  ;;  %1099 = vmatpush1.bf16.msra.mxu1 %v1465_v1  ;;  %v1531_v0 = vld [vmem:[#allocation8 + $0x30c] ss:$16 sps:$4 sm:$0xff]   ;;  %v1526_v1 = vld [vmem:[#allocation8 + $0x300] ss:$16 sps:$4 sm:$0xff]  }
  0x6a   :  { %1018 = vmatprep.subr.bf16.mxu0 %v1466_v2  ;;  %1100 = vmatprep.subr.bf16.mxu1 %v1468_v3  ;;  %v1529_v2 = vld [vmem:[#allocation8 + $0x308] ss:$16 sps:$4 sm:$0xff]  }
  0x6c   :  { %v1575_v16 = vpop.eup %1574 }
  0x6d   :  { %1019 = vmatpush1.bf16.msra.mxu0 %v1470_v4  ;;  %1101 = vmatpush1.bf16.msra.mxu1 %v1471_v7  ;;  %v1577_v17 = vpop.eup %1576  ;;  %v181_v18 = vadd.f32 1.0, %v1575_v16  ;;  %v1534_v4 = vld [vmem:[#allocation8 + $0x324] ss:$16 sps:$4 sm:$0xff]   ;;  %v1532_v7 = vld [vmem:[#allocation8 + $0x320] ss:$16 sps:$4 sm:$0xff]  }
  0x6e   :  { %1020 = vmatprep.subr.bf16.mxu0 %v1472_v10  ;;  %1102 = vmatprep.subr.bf16.mxu1 %v1474_v11  ;;  %v180_v19 = vadd.f32 1.0, %v1577_v17  ;;  %v1540_v10 = vld [vmem:[#allocation8 + $0x344] ss:$16 sps:$4 sm:$0xff]   ;;  %v1543_v11 = vld [vmem:[#allocation8 + $0x34c] ss:$16 sps:$4 sm:$0xff]  }
  0x6f   :  { %1578 = vrcp.f32 %v181_v18  ;;  %v1549_v16 = vld [vmem:[#allocation8 + $0x36c] ss:$16 sps:$4 sm:$0xff]   ;;  %v1544_v18 = vld [vmem:[#allocation8 + $0x360] ss:$16 sps:$4 sm:$0xff]  }
  0x70   :  { %1580 = vrcp.f32 %v180_v19  ;;  %v1547_v19 = vld [vmem:[#allocation8 + $0x368] ss:$16 sps:$4 sm:$0xff]  }
  0x71   :  { %1021 = vmatpush1.bf16.msra.mxu0 %v1476_v12  ;;  %1103 = vmatpush1.bf16.msra.mxu1 %v1477_v13  ;;  %1582 = vpow2.f32 %v1225_v37  ;;  %v1538_v13 = vld [vmem:[#allocation8 + $0x340] ss:$16 sps:$4 sm:$0xff]   ;;  %v1571_v37 = vld [vmem:[#allocation8 + $0x3e8] ss:$16 sps:$4 sm:$0xff]  }
  0x72   :  { %1031 = vmatprep.subr.bf16.mxu0 %v1480_v14  ;;  %1113 = vmatprep.subr.bf16.mxu1 %v1483_v15  ;;  %v1541_v14 = vld [vmem:[#allocation8 + $0x348] ss:$16 sps:$4 sm:$0xff]   ;;  %v1546_v15 = vld [vmem:[#allocation8 + $0x364] ss:$16 sps:$4 sm:$0xff]  }
  0x79   :  { %v1579_v20 = vpop.eup %1578 }
  0x7a   :  { %v1581_v21 = vpop.eup %1580  ;;  %v193_v22 = vmul.f32 %v1579_v20, %v165_v5  ;;  %v1537_v5 = vld [vmem:[#allocation8 + $0x32c] ss:$16 sps:$4 sm:$0xff]   ;;  %v1552_v20 = vld [vmem:[#allocation8 + $0x384] ss:$16 sps:$4 sm:$0xff]  }
  0x7b   :  { %v192_v24 = vmul.f32 %v1581_v21, %v164_v6  ;;  %v1583_v49 = vpop.eup %1582  ;;  %v1555_v21 = vld [vmem:[#allocation8 + $0x38c] ss:$16 sps:$4 sm:$0xff]  }
  0x7c   :  { %v197_v25 = vpack.c.bf16 %v193_v22, %v193_v22  ;;  %v183_v54 = vadd.f32 1.0, %v1583_v49  ;;  %v1550_v22 = vld [vmem:[#allocation8 + $0x380] ss:$16 sps:$4 sm:$0xff]  }
  0x7d   :  { %v196_v28 = vpack.c.bf16 %v192_v24, %v192_v24  ;;  %v1558_v24 = vld [vmem:[#allocation8 + $0x3a4] ss:$16 sps:$4 sm:$0xff]  }
  0x7e   :  { %1022 = vmatprep.mubr.bf16.mxu0 %v197_v25  ;;  %1104 = vmatprep.mubr.bf16.mxu1 %v197_v25  ;;  %1584 = vrcp.f32 %v183_v54  ;;  %v1561_v25 = vld [vmem:[#allocation8 + $0x3ac] ss:$16 sps:$4 sm:$0xff]  }
  0x7f   :  { %1023 = vmatmul.mubr.bf16.vlgmr.msra.gmra.mrb[0].mxu0 %v196_v28  ;;  %1105 = vmatmul.mubr.bf16.vlgmr.msra.gmra.mrb[0].mxu1 %v196_v28  ;;  %1586 = vpow2.f32 %v1224_v60  ;;  %v1564_v28 = vld [vmem:[#allocation8 + $0x3c4] ss:$16 sps:$4 sm:$0xff]  }
  0x80   :  { %1032 = vmatpush1.bf16.msra.mxu0 %v1478_v23  ;;  %1114 = vmatpush1.bf16.msra.mxu1 %v1481_v26  ;;  %v1553_v23 = vld [vmem:[#allocation8 + $0x388] ss:$16 sps:$4 sm:$0xff]   ;;  %v1556_v26 = vld [vmem:[#allocation8 + $0x3a0] ss:$16 sps:$4 sm:$0xff]  }
  0x81   :  { %1033 = vmatprep.subr.bf16.mxu0 %v1486_v27  ;;  %1115 = vmatprep.subr.bf16.mxu1 %v1489_v29  ;;  %v1559_v27 = vld [vmem:[#allocation8 + $0x3a8] ss:$16 sps:$4 sm:$0xff]   ;;  %v1567_v29 = vld [vmem:[#allocation8 + $0x3cc] ss:$16 sps:$4 sm:$0xff]  }
  0x84   :  { %1034 = vmatpush1.bf16.msra.mxu0 %v1484_v30  ;;  %1116 = vmatpush1.bf16.msra.mxu1 %v1487_v31  ;;  %v1562_v31 = vld [vmem:[#allocation8 + $0x3c0] ss:$16 sps:$4 sm:$0xff]  }
  0x85   :  { %1035 = vmatprep.subr.bf16.mxu0 %v1492_v32  ;;  %1117 = vmatprep.subr.bf16.mxu1 %v1495_v33  ;;  %v1565_v32 = vld [vmem:[#allocation8 + $0x3c8] ss:$16 sps:$4 sm:$0xff]   ;;  %v1570_v33 = vld [vmem:[#allocation8 + $0x3e4] ss:$16 sps:$4 sm:$0xff]  }
  0x88   :  { %1036 = vmatpush1.bf16.msra.mxu0 %v1490_v35  ;;  %1118 = vmatpush1.bf16.msra.mxu1 %v1493_v36  ;;  %v1585_v3 = vpop.eup %1584  ;;  %v1568_v36 = vld [vmem:[#allocation8 + $0x3e0] ss:$16 sps:$4 sm:$0xff]  }
  0x89   :  { %1037 = vmatprep.subr.bf16.mxu0 %v1498_v38  ;;  %1119 = vmatprep.subr.bf16.mxu1 %v1501_v39  ;;  %v195_v6 = vmul.f32 %v1585_v3, %v1820_v34  ;;  %v1587_v12 = vpop.eup %1586  ;;  %v1573_v34 = vld [vmem:[#allocation8 + $0x3ec] ss:$16 sps:$4 sm:$0xff]   ;;  %v331_v39 = vshrl.u32 %v67_v40, 7 }
  0x8a   :  { %v182_v17 = vadd.f32 1.0, %v1587_v12 }
  0x8b   :  { %v199_v9 = vpack.c.bf16 %v195_v6, %v195_v6 }
  0x8c   :  { %1038 = vmatpush1.bf16.msra.mxu0 %v1496_v41  ;;  %1120 = vmatpush1.bf16.msra.mxu1 %v1499_v42  ;;  %1588 = vrcp.f32 %v182_v17  ;;  %v332_v41 = vsub.s32 0, %v331_v39  ;;  %v340_v42 = vsub.s32 2, %v331_v39 }
  0x8d   :  { %1039 = vmatprep.subr.bf16.mxu0 %v1504_v43  ;;  %1121 = vmatprep.subr.bf16.mxu1 %v1507_v44  ;;  %v328_v43 = vld [vmem:[%s1847_s3] sm:$0xf]  ;;  %v336_v44 = vsub.s32 1, %v331_v39  ;;  %s1644_s3 = scalar_lea.vmem %s1165_s19, 512 }
  0x8e   :  { %1063 = vmatprep.mubr.bf16.mxu0 %v199_v9  ;;  %1145 = vmatprep.mubr.bf16.mxu1 %v199_v9  ;;  %p1645_p5 = scmp.ne.s32.totalorder %s1165_s19, %s1644_s3  ;;  %p1650_p7 = scmp.lt.s32.totalorder %s1644_s3, %s1644_s3 }
  0x90   :  { %1040 = vmatpush1.bf16.msra.mxu0 %v1502_v45  ;;  %1122 = vmatpush1.bf16.msra.mxu1 %v1505_v46  ;;  %v344_v45 = vsub.s32 3, %v331_v39  ;;  %v333_v46 = vrot.slane %v328_v43, %v332_v41  ;;  %p1651_p8 = por %p1650_p7, %p1649_p6 }
  0x91   :  { %1041 = vmatprep.subr.bf16.mxu0 %v1510_v47  ;;  %1123 = vmatprep.subr.bf16.mxu1 %v1513_v48  ;;  %v341_v47 = vrot.slane %v328_v43, %v340_v42  ;;  %v337_v48 = vrot.slane %v328_v43, %v336_v44 }
  0x92   :  { %v345_v49 = vrot.slane %v328_v43, %v344_v45  ;;  %p1652_p9 = pnand %p1651_p8, %p1645_p5 }
  0x94   :  { %1042 = vmatpush1.bf16.msra.mxu0 %v1508_v50  ;;  %1124 = vmatpush1.bf16.msra.mxu1 %v1511_v51 }
  0x95   :  { %1043 = vmatprep.subr.bf16.mxu0 %v1516_v52  ;;  %1125 = vmatprep.subr.bf16.mxu1 %v1519_v53 }
  0x96   :  { %v1589_v30 = vpop.eup %1588 }
  0x97   :  { %v194_v35 = vmul.f32 %v1589_v30, %v1823_v55 }
  0x98   :  { %1044 = vmatpush1.bf16.msra.mxu0 %v1514_v56  ;;  %1126 = vmatpush1.bf16.msra.mxu1 %v1517_v57 }
  0x99   :  { %1045 = vmatprep.subr.bf16.mxu0 %v1522_v58  ;;  %1127 = vmatprep.subr.bf16.mxu1 %v1525_v59  ;;  %v198_v38 = vpack.c.bf16 %v194_v35, %v194_v35 }
  0x9c   :  { %1046 = vmatpush1.bf16.msra.mxu0 %v1520_v61  ;;  %1128 = vmatpush1.bf16.msra.mxu1 %v1523_v62 }
  0x9d   :  { %1047 = vmatprep.subr.bf16.mxu0 %v1528_v63  ;;  %1129 = vmatprep.subr.bf16.mxu1 %v1531_v0 }
  0xa0   :  { %1048 = vmatpush1.bf16.msra.mxu0 %v1526_v1  ;;  %1130 = vmatpush1.bf16.msra.mxu1 %v1529_v2 }
  0xa1   :  { %1049 = vmatprep.subr.bf16.mxu0 %v1534_v4  ;;  %1131 = vmatprep.subr.bf16.mxu1 %v1537_v5 }
  0xa4   :  { %1050 = vmatpush1.bf16.msra.mxu0 %v1532_v7  ;;  %1132 = vmatpush1.bf16.msra.mxu1 %v1535_v8 }
  0xa5   :  { %1051 = vmatprep.subr.bf16.mxu0 %v1540_v10  ;;  %1133 = vmatprep.subr.bf16.mxu1 %v1543_v11 }
  0xa8   :  { %1052 = vmatpush1.bf16.msra.mxu0 %v1538_v13  ;;  %1134 = vmatpush1.bf16.msra.mxu1 %v1541_v14 }
  0xa9   :  { %1053 = vmatprep.subr.bf16.mxu0 %v1546_v15  ;;  %1135 = vmatprep.subr.bf16.mxu1 %v1549_v16 }
  0xac   :  { %1054 = vmatpush1.bf16.msra.mxu0 %v1544_v18  ;;  %1136 = vmatpush1.bf16.msra.mxu1 %v1547_v19 }
  0xad   :  { %1055 = vmatprep.subr.bf16.mxu0 %v1552_v20  ;;  %1137 = vmatprep.subr.bf16.mxu1 %v1555_v21 }
  0xb0   :  { %1056 = vmatpush1.bf16.msra.mxu0 %v1550_v22  ;;  %1138 = vmatpush1.bf16.msra.mxu1 %v1553_v23 }
  0xb1   :  { %1057 = vmatprep.subr.bf16.mxu0 %v1558_v24  ;;  %1139 = vmatprep.subr.bf16.mxu1 %v1561_v25 }
  0xb4   :  { %1058 = vmatpush1.bf16.msra.mxu0 %v1556_v26  ;;  %1140 = vmatpush1.bf16.msra.mxu1 %v1559_v27 }
  0xb5   :  { %1059 = vmatprep.subr.bf16.mxu0 %v1564_v28  ;;  %1141 = vmatprep.subr.bf16.mxu1 %v1567_v29 }
  0xb8   :  { %1060 = vmatpush1.bf16.msra.mxu0 %v1562_v31  ;;  %1142 = vmatpush1.bf16.msra.mxu1 %v1565_v32 }
  0xb9   :  { %1061 = vmatprep.subr.bf16.mxu0 %v1570_v33  ;;  %1143 = vmatprep.subr.bf16.mxu1 %v1573_v34 }
  0xbc   :  { %1062 = vmatpush1.bf16.msra.mxu0 %v1568_v36  ;;  %1144 = vmatpush1.bf16.msra.mxu1 %v1571_v37 }
  0xbf   :  { %1064 = vmatmul.mubr.bf16.vlgmr.msra.gmra.mrb[0].mxu0 %v198_v38  ;;  %1146 = vmatmul.mubr.bf16.vlgmr.msra.gmra.mrb[0].mxu1 %v198_v38 }
 0x192   :  { %v1065_v50 = vpop.f32.mrb[0].mxu0  ;;  %v1147_v51 = vpop.f32.mrb[0].mxu1 }
 0x193   :  { %v1362_v52 = vadd.f32 %v1065_v50, %v333_v46  ;;  %v1364_v53 = vadd.f32 %v1147_v51, %v341_v47  ;;  %v1067_v54 = vpop.f32.mrb[1].mxu0  ;;  %v1149_v40 = vpop.f32.mrb[1].mxu1 }
 0x194   :  { %v1363_v55 = vadd.f32 %v1067_v54, %v337_v48  ;;  %v1365_v56 = vadd.f32 %v1149_v40, %v345_v49  ;;  %v1069_v57 = vpop.f32.mrb[2].mxu0  ;;  %v1151_v58 = vpop.f32.mrb[2].mxu1 }
 0x195   :  { %1154 = vst [vmem:[#allocation10] sm:$0xff] %v1362_v52  ;;  %1156 = vst [vmem:[#allocation10 + $0x10] sm:$0xff] %v1364_v53  ;;  %v1070_v59 = vpop.f32.mrb[3].mxu0  ;;  %v1152_v60 = vpop.f32.mrb[3].mxu1 }
 0x196   :  { %1155 = vst [vmem:[#allocation10 + $0x8] sm:$0xff] %v1363_v55  ;;  %1157 = vst [vmem:[#allocation10 + $0x18] sm:$0xff] %v1365_v56 }
 0x197   :  { %1655 = shalt.err (!%p1652_p9)
}
 0x198   :  { %s1656_s1 = scalar_lea.hbm %s1848_s4, 512 }
 0x199   :  { %p1657_p10 = scmp.ne.s32.totalorder %s1848_s4, %s1656_s1  ;;  %p1660_p11 = scmp.lt.u32.totalorder %s1656_s1, %s1848_s4 }
 0x19b   :  { %p1662_p12 = pnand %p1660_p11, %p1657_p10 }
 0x19d   :  { %1665 = shalt.err (!%p1662_p12)
}
 0x19e   :  { %1167 = dma.vmem_to_hbm [thread:$0]  %s1165_s19, 512, %s1848_s4, [#allocation5]  }
 0x19f   :  { %1672 = dma.done.wait [#allocation5], 512  }
 0x1a0   :  { %1673 = vsyncadd [#allocation5], 4294966784 }
 0x1a1   :  { %1171 = vsyncpa [#allocation4], 1 }
 0x1a2   :  { %1172 = vsyncpa [#allocation9], 1 }
 0x1a3   :  { %1173 = vsyncpa [#allocation5], 1 }
 0x1a4   :  { %1174 = vsyncpa [#allocation6], 1 }

</bundles_post_ra>
